<compile_context>
chip_gen: v7x
topology: tpu7x:2x2x1
jax: 0.10.0
libtpu: 0.0.40
codegen_flags: <defaults>
</compile_context>

<pallas_src>
import functools

import jax
import jax.numpy as jnp
from jax.experimental import pallas as pl
from jax.experimental.pallas import tpu as pltpu


def _embrace_kernel(x_ref, w_ref, b_ref, idx_ref, o_ref, *, num_modalities):
    """One batch tile: docking (bf16 MXU matmul, f32 acc) + masked select-combine."""
    idx = idx_ref[...]                                   # [bt, C] int32
    out = jnp.zeros(o_ref.shape, jnp.float32)
    # Static (small) modality loop, fully unrolled.
    for m in range(num_modalities):
        dock = jnp.dot(x_ref[m], w_ref[m], preferred_element_type=jnp.float32)
        dock = jnp.maximum(dock + b_ref[m], 0.0)         # bias + ReLU (f32)
        # Equivalent to the reference one_hot * dock + sum: exactly one winner per (b, c).
        out = jnp.where(idx == m, dock, out)
    o_ref[...] = out


def embracenet_forward(input_list, weights, biases, key,
                       availabilities=None, selection_probabilities=None,
                       embracement_size=256, batch_tile=256):
    """Pallas implementation of EmbraceNet.forward (bypass_docking=False)."""
    num_modalities = len(input_list)
    batch = input_list[0].shape[0]
    c = embracement_size
    d_max = max(x.shape[1] for x in input_list)

    # --- selection probabilities & categorical sampling (wrapper side) -----------------
    if availabilities is None:
        availabilities = jnp.ones((batch, num_modalities), jnp.float32)
    else:
        availabilities = availabilities.astype(jnp.float32)
    if selection_probabilities is None:
        selection_probabilities = jnp.ones((batch, num_modalities), jnp.float32)
    p = selection_probabilities.astype(jnp.float32) * availabilities
    p_sum = jnp.sum(p, axis=-1, keepdims=True)
    # Guard rows where every modality is unavailable (reference would divide by zero).
    p = jnp.where(p_sum > 0, p / jnp.where(p_sum > 0, p_sum, 1.0),
                  jnp.float32(1.0 / num_modalities))
    cum = jnp.cumsum(p, axis=-1)                                         # [B, M]
    u = jax.random.uniform(key, (batch, c), jnp.float32)                 # [B, C]
    idx = jnp.sum((u[:, :, None] >= cum[:, None, :]).astype(jnp.int32), axis=-1)
    idx = jnp.minimum(idx, num_modalities - 1).astype(jnp.int32)         # [B, C]

    # --- batch tiling -------------------------------------------------------------------
    bt = min(batch_tile, batch)
    bt = max(8, ((bt + 7) // 8) * 8)                     # multiple of 8 sublanes
    batch_pad = ((batch + bt - 1) // bt) * bt

    # --- pad & stack modalities (bf16 matmul operands, f32 bias) ------------------------
    x_stack = jnp.stack(
        [jnp.pad(x.astype(jnp.bfloat16),
                 ((0, batch_pad - batch), (0, d_max - x.shape[1])))
         for x in input_list])                                           # [M, Bp, Dmax]
    w_stack = jnp.stack(
        [jnp.pad(w.astype(jnp.bfloat16), ((0, d_max - w.shape[0]), (0, 0)))
         for w in weights])                                              # [M, Dmax, C]
    b_stack = jnp.stack([b.astype(jnp.float32).reshape(1, c) for b in biases])  # [M, 1, C]
    idx_pad = jnp.pad(idx, ((0, batch_pad - batch), (0, 0)))             # [Bp, C]

    kernel = functools.partial(_embrace_kernel, num_modalities=num_modalities)

    out = pl.pallas_call(
        kernel,
        out_shape=jax.ShapeDtypeStruct((batch_pad, c), jnp.float32),
        grid=(batch_pad // bt,),
        in_specs=[
            pl.BlockSpec((num_modalities, bt, d_max), lambda i: (0, i, 0)),   # x batch tile
            pl.BlockSpec((num_modalities, d_max, c), lambda i: (0, 0, 0)),    # weights (resident)
            pl.BlockSpec((num_modalities, 1, c), lambda i: (0, 0, 0)),        # biases (resident)
            pl.BlockSpec((bt, c), lambda i: (i, 0)),                          # sampled indices
        ],
        out_specs=pl.BlockSpec((bt, c), lambda i: (i, 0)),
        compiler_params=pltpu.CompilerParams(
            dimension_semantics=("parallel",)),          # batch tiles shard across TCs (v7x)
    )(x_stack, w_stack, b_stack, idx_pad)

    return out[:batch]


if __name__ == "__main__":
    key = jax.random.PRNGKey(0)
    batch = 8
    embracement_size = 256
    input_size_list = [32, 16, 24]
    num_modalities = len(input_size_list)

    # Deterministic synthetic parameters (shapes per nn.Linear(input_size, c)).
    weights, biases, inputs = [], [], []
    for d in input_size_list:
        key, kw, kb, kx = jax.random.split(key, 4)
        scale = 1.0 / jnp.sqrt(jnp.float32(d))
        weights.append(jax.random.uniform(kw, (d, embracement_size), jnp.float32,
                                          minval=-scale, maxval=scale))
        biases.append(jax.random.uniform(kb, (embracement_size,), jnp.float32,
                                         minval=-scale, maxval=scale))
        inputs.append(jax.random.normal(kx, (batch, d), jnp.float32))

    key, k_sel = jax.random.split(key)
    out = embracenet_forward(inputs, weights, biases, k_sel,
                             embracement_size=embracement_size)
    out = jax.block_until_ready(out)

    assert out.shape == (batch, embracement_size)
    assert bool(jnp.all(jnp.isfinite(out)))

    # Sanity check: every output element must equal one of the modality docking outputs
    # (relu(x_i @ W_i + b_i), computed with the same bf16 operands / f32 accumulation)
    # for that (batch, channel) position.
    dock_ref = jnp.stack([
        jax.nn.relu(
            jnp.dot(inputs[i].astype(jnp.bfloat16), weights[i].astype(jnp.bfloat16),
                    preferred_element_type=jnp.float32) + biases[i][None, :])
        for i in range(num_modalities)
    ])                                                   # [M, B, C]
    min_diff = jnp.min(jnp.abs(dock_ref - out[None, :, :]), axis=0)
    assert bool(jnp.all(min_diff < 1e-3)), float(jnp.max(min_diff))

    print("KERNEL_OK")
</pallas_src>

<mosaic_0001>
module attributes {stable_mosaic.version = 11 : i64} {
  func.func @_embrace_kernel(%arg0: i32, %arg1: memref<3x8x32xbf16, #tpu.memory_space<vmem>>, %arg2: memref<3x32x256xbf16, #tpu.memory_space<vmem>>, %arg3: memref<3x1x256xf32, #tpu.memory_space<vmem>>, %arg4: memref<8x256xi32, #tpu.memory_space<vmem>>, %arg5: memref<8x256xf32, #tpu.memory_space<vmem>>) attributes {dimension_semantics = [#tpu.dimension_semantics<parallel>], iteration_bounds = array<i64: 1>, scalar_prefetch = 0 : i64, scratch_operands = 0 : i64, tpu.core_type = #tpu.core_type<tc>, window_params = [{transform_indices = @transform_0, window_bounds = array<i64: 3, 8, 32>}, {pipeline_mode = #tpu.pipeline_mode<synchronous>, transform_indices = @transform_1, window_bounds = array<i64: 3, 32, 256>}, {pipeline_mode = #tpu.pipeline_mode<synchronous>, transform_indices = @transform_2, window_bounds = array<i64: 3, 1, 256>}, {transform_indices = @transform_3, window_bounds = array<i64: 8, 256>}, {transform_indices = @transform_4, window_bounds = array<i64: 8, 256>}]} {
    %c0 = arith.constant 0 : index
    %c0_0 = arith.constant 0 : index
    %0 = vector.load %arg4[%c0, %c0_0] : memref<8x256xi32, #tpu.memory_space<vmem>>, vector<8x256xi32>
    %cst = arith.constant 0.000000e+00 : f32
    %1 = vector.broadcast %cst : f32 to vector<8x256xf32>
    %c0_1 = arith.constant 0 : index
    %c0_2 = arith.constant 0 : index
    %c0_3 = arith.constant 0 : index
    %2 = vector.load %arg1[%c0_1, %c0_2, %c0_3] : memref<3x8x32xbf16, #tpu.memory_space<vmem>>, vector<1x8x32xbf16>
    %3 = vector.shape_cast %2 : vector<1x8x32xbf16> to vector<8x32xbf16>
    %c0_4 = arith.constant 0 : index
    %c0_5 = arith.constant 0 : index
    %c0_6 = arith.constant 0 : index
    %4 = vector.load %arg2[%c0_4, %c0_5, %c0_6] : memref<3x32x256xbf16, #tpu.memory_space<vmem>>, vector<1x32x256xbf16>
    %5 = vector.shape_cast %4 : vector<1x32x256xbf16> to vector<32x256xbf16>
    %cst_7 = arith.constant dense<0.000000e+00> : vector<8x256xf32>
    %6 = tpu.matmul %3, %5, %cst_7 {dimension_numbers = #tpu.dot_dimension_numbers<[1], [0], [0], [1], [0, 0, 1, 1], [], []>} : vector<8x32xbf16>, vector<32x256xbf16>, vector<8x256xf32> -> vector<8x256xf32>
    %c0_8 = arith.constant 0 : index
    %c0_9 = arith.constant 0 : index
    %c0_10 = arith.constant 0 : index
    %7 = vector.load %arg3[%c0_8, %c0_9, %c0_10] : memref<3x1x256xf32, #tpu.memory_space<vmem>>, vector<1x1x256xf32>
    %8 = vector.shape_cast %7 : vector<1x1x256xf32> to vector<1x256xf32>
    %9 = vector.broadcast %8 : vector<1x256xf32> to vector<8x256xf32>
    %10 = arith.addf %6, %9 : vector<8x256xf32>
    %cst_11 = arith.constant 0.000000e+00 : f32
    %11 = vector.broadcast %cst_11 : f32 to vector<8x256xf32>
    %12 = arith.maximumf %10, %11 : vector<8x256xf32>
    %c0_i32 = arith.constant 0 : i32
    %13 = vector.broadcast %c0_i32 : i32 to vector<8x256xi32>
    %14 = arith.cmpi eq, %0, %13 : vector<8x256xi32>
    %15 = arith.select %14, %12, %1 : vector<8x256xi1>, vector<8x256xf32>
    %c1 = arith.constant 1 : index
    %c0_12 = arith.constant 0 : index
    %c0_13 = arith.constant 0 : index
    %16 = vector.load %arg1[%c1, %c0_12, %c0_13] : memref<3x8x32xbf16, #tpu.memory_space<vmem>>, vector<1x8x32xbf16>
    %17 = vector.shape_cast %16 : vector<1x8x32xbf16> to vector<8x32xbf16>
    %c1_14 = arith.constant 1 : index
    %c0_15 = arith.constant 0 : index
    %c0_16 = arith.constant 0 : index
    %18 = vector.load %arg2[%c1_14, %c0_15, %c0_16] : memref<3x32x256xbf16, #tpu.memory_space<vmem>>, vector<1x32x256xbf16>
    %19 = vector.shape_cast %18 : vector<1x32x256xbf16> to vector<32x256xbf16>
    %cst_17 = arith.constant dense<0.000000e+00> : vector<8x256xf32>
    %20 = tpu.matmul %17, %19, %cst_17 {dimension_numbers = #tpu.dot_dimension_numbers<[1], [0], [0], [1], [0, 0, 1, 1], [], []>} : vector<8x32xbf16>, vector<32x256xbf16>, vector<8x256xf32> -> vector<8x256xf32>
    %c1_18 = arith.constant 1 : index
    %c0_19 = arith.constant 0 : index
    %c0_20 = arith.constant 0 : index
    %21 = vector.load %arg3[%c1_18, %c0_19, %c0_20] : memref<3x1x256xf32, #tpu.memory_space<vmem>>, vector<1x1x256xf32>
    %22 = vector.shape_cast %21 : vector<1x1x256xf32> to vector<1x256xf32>
    %23 = vector.broadcast %22 : vector<1x256xf32> to vector<8x256xf32>
    %24 = arith.addf %20, %23 : vector<8x256xf32>
    %cst_21 = arith.constant 0.000000e+00 : f32
    %25 = vector.broadcast %cst_21 : f32 to vector<8x256xf32>
    %26 = arith.maximumf %24, %25 : vector<8x256xf32>
    %c1_i32 = arith.constant 1 : i32
    %27 = vector.broadcast %c1_i32 : i32 to vector<8x256xi32>
    %28 = arith.cmpi eq, %0, %27 : vector<8x256xi32>
    %29 = arith.select %28, %26, %15 : vector<8x256xi1>, vector<8x256xf32>
    %c2 = arith.constant 2 : index
    %c0_22 = arith.constant 0 : index
    %c0_23 = arith.constant 0 : index
    %30 = vector.load %arg1[%c2, %c0_22, %c0_23] : memref<3x8x32xbf16, #tpu.memory_space<vmem>>, vector<1x8x32xbf16>
    %31 = vector.shape_cast %30 : vector<1x8x32xbf16> to vector<8x32xbf16>
    %c2_24 = arith.constant 2 : index
    %c0_25 = arith.constant 0 : index
    %c0_26 = arith.constant 0 : index
    %32 = vector.load %arg2[%c2_24, %c0_25, %c0_26] : memref<3x32x256xbf16, #tpu.memory_space<vmem>>, vector<1x32x256xbf16>
    %33 = vector.shape_cast %32 : vector<1x32x256xbf16> to vector<32x256xbf16>
    %cst_27 = arith.constant dense<0.000000e+00> : vector<8x256xf32>
    %34 = tpu.matmul %31, %33, %cst_27 {dimension_numbers = #tpu.dot_dimension_numbers<[1], [0], [0], [1], [0, 0, 1, 1], [], []>} : vector<8x32xbf16>, vector<32x256xbf16>, vector<8x256xf32> -> vector<8x256xf32>
    %c2_28 = arith.constant 2 : index
    %c0_29 = arith.constant 0 : index
    %c0_30 = arith.constant 0 : index
    %35 = vector.load %arg3[%c2_28, %c0_29, %c0_30] : memref<3x1x256xf32, #tpu.memory_space<vmem>>, vector<1x1x256xf32>
    %36 = vector.shape_cast %35 : vector<1x1x256xf32> to vector<1x256xf32>
    %37 = vector.broadcast %36 : vector<1x256xf32> to vector<8x256xf32>
    %38 = arith.addf %34, %37 : vector<8x256xf32>
    %cst_31 = arith.constant 0.000000e+00 : f32
    %39 = vector.broadcast %cst_31 : f32 to vector<8x256xf32>
    %40 = arith.maximumf %38, %39 : vector<8x256xf32>
    %c2_i32 = arith.constant 2 : i32
    %41 = vector.broadcast %c2_i32 : i32 to vector<8x256xi32>
    %42 = arith.cmpi eq, %0, %41 : vector<8x256xi32>
    %43 = arith.select %42, %40, %29 : vector<8x256xi1>, vector<8x256xf32>
    %c0_32 = arith.constant 0 : index
    %c0_33 = arith.constant 0 : index
    %44 = vector.load %arg5[%c0_32, %c0_33] : memref<8x256xf32, #tpu.memory_space<vmem>>, vector<8x256xf32>
    tpu.vector_store %arg5[%c0_32, %c0_33], %43 {strides = array<i32>} : memref<8x256xf32, #tpu.memory_space<vmem>>, vector<8x256xf32>,
    return
  }
  func.func @transform_0(%arg0: i32) -> (i32, i32, i32) {
    %c0_i32 = arith.constant 0 : i32
    %c0_i32_0 = arith.constant 0 : i32
    %c0_i32_1 = arith.constant 0 : i32
    return %c0_i32, %arg0, %c0_i32_0 : i32, i32, i32
  }
  func.func @transform_1(%arg0: i32) -> (i32, i32, i32) {
    %c0_i32 = arith.constant 0 : i32
    %c0_i32_0 = arith.constant 0 : i32
    %c0_i32_1 = arith.constant 0 : i32
    %c0_i32_2 = arith.constant 0 : i32
    return %c0_i32, %c0_i32_0, %c0_i32_1 : i32, i32, i32
  }
  func.func @transform_2(%arg0: i32) -> (i32, i32, i32) {
    %c0_i32 = arith.constant 0 : i32
    %c0_i32_0 = arith.constant 0 : i32
    %c0_i32_1 = arith.constant 0 : i32
    %c0_i32_2 = arith.constant 0 : i32
    return %c0_i32, %c0_i32_0, %c0_i32_1 : i32, i32, i32
  }
  func.func @transform_3(%arg0: i32) -> (i32, i32) {
    %c0_i32 = arith.constant 0 : i32
    %c0_i32_0 = arith.constant 0 : i32
    return %arg0, %c0_i32 : i32, i32
  }
  func.func @transform_4(%arg0: i32) -> (i32, i32) {
    %c0_i32 = arith.constant 0 : i32
    %c0_i32_0 = arith.constant 0 : i32
    return %arg0, %c0_i32 : i32, i32
  }
}

</mosaic_0001>

<bundles_post_ra>
// kernel: tpu_custom_call.1
= control target key start
LH: loop header
LB: loop body
LE: loop exit
PB: predicated region body
PF: predicated region fallthrough
CT: control target
= control target key end

     0   :  { %9 = vsyncpa [#allocation3], 0  ;;  %s575_s0 = inlined_call_operand.hbm [shape: bf16[3,8,32], index: 0, kind: input, shape index: {}]   ;;  %s576_s1 = inlined_call_operand.hbm [shape: bf16[3,32,256], index: 1, kind: input, shape index: {}]   ;;  %s577_s2 = inlined_call_operand.vmem [shape: f32[3,1,256], index: 2, kind: input, shape index: {}]   ;;  %s578_s3 = inlined_call_operand.hbm [shape: s32[8,256], index: 3, kind: input, shape index: {}]   ;;  %s579_s4 = inlined_call_operand.hbm [shape: f32[8,256], index: 4, kind: output, shape index: {}]  }
   0x1   :  { %10 = vsyncpa [#allocation6], 0 }
   0x2   :  { %11 = vsyncpa [#allocation4], 0  ;;  %s484_s15 = smov [#allocation5]   ;;  %s390_s19 = scalar_lea.hbm %s576_s1, 1536 }
   0x3   :  { %s29_s16 = sshll.u32 %s484_s15, 4  ;;  %p391_p0 = scmp.ne.s32.totalorder %s576_s1, %s390_s19  ;;  %s30_s16 = int_to_ptr.vmem [resolvable:$true] %s29_s16 }
   0x4   :  { %p394_p1 = scmp.lt.u32.totalorder %s390_s19, %s576_s1 }
   0x6   :  { %p396_p2 = pnand %p394_p1, %p391_p0 }
   0x8   :  { %399 = shalt.err (!%p396_p2)
}
   0x9   :  { %s400_s24 = scalar_lea.vmem %s30_s16, 1536  ;;  %p405_p4 = scmp.lt.s32.totalorder %s30_s16, %s30_s16 }
   0xa   :  { %p401_p3 = scmp.ne.s32.totalorder %s30_s16, %s400_s24  ;;  %p406_p5 = scmp.lt.s32.totalorder %s400_s24, %s400_s24 }
   0xc   :  { %p407_p6 = por %p406_p5, %p405_p4 }
   0xe   :  { %p408_p7 = pnand %p407_p6, %p401_p3 }
  0x10   :  { %411 = shalt.err (!%p408_p7)
}
  0x11   :  { %s485_s25 = smov 128   ;;  %s486_s26 = smov 8  }
  0x12   :  { %35 = dma.hbm_to_vmem [thread:$0]  %s576_s1, 1536, %s30_s16, [#allocation6], %s485_s25, %s485_s25, %s486_s26  }
  0x13   :  { %s487_s29 = smov [#allocation2]   ;;  %s412_s7 = scalar_lea.hbm %s575_s0, 192 }
  0x14   :  { %s17_s30 = sshll.u32 %s487_s29, 4  ;;  %p413_p8 = scmp.ne.s32.totalorder %s575_s0, %s412_s7  ;;  %s18_s30 = int_to_ptr.vmem [resolvable:$true] %s17_s30 }
  0x15   :  { %p416_p9 = scmp.lt.u32.totalorder %s412_s7, %s575_s0 }
  0x17   :  { %p418_p10 = pnand %p416_p9, %p413_p8 }
  0x19   :  { %421 = shalt.err (!%p418_p10)
}
  0x1a   :  { %s422_s12 = scalar_lea.vmem %s18_s30, 192  ;;  %p427_p12 = scmp.lt.s32.totalorder %s18_s30, %s18_s30 }
  0x1b   :  { %p423_p11 = scmp.ne.s32.totalorder %s18_s30, %s422_s12  ;;  %p428_p13 = scmp.lt.s32.totalorder %s422_s12, %s422_s12 }
  0x1d   :  { %p429_p0 = por %p428_p13, %p427_p12 }
  0x1f   :  { %p430_p1 = pnand %p429_p0, %p423_p11 }
  0x21   :  { %433 = shalt.err (!%p430_p1)
}
  0x22   :  { %s488_s1 = smov 64   ;;  %s489_s13 = smov 4  }
  0x23   :  { %23 = dma.hbm_to_vmem [thread:$0]  %s575_s0, 192, %s18_s30, [#allocation3], %s488_s1, %s488_s1, %s489_s13  }
  0x24   :  { %s490_s16 = smov [#allocation7]   ;;  %s434_s20 = scalar_lea.hbm %s578_s3, 256 }
  0x25   :  { %s44_s17 = sshll.u32 %s490_s16, 4  ;;  %p435_p2 = scmp.ne.s32.totalorder %s578_s3, %s434_s20  ;;  %s45_s17 = int_to_ptr.vmem [resolvable:$true] %s44_s17 }
  0x26   :  { %p438_p3 = scmp.lt.u32.totalorder %s434_s20, %s578_s3 }
  0x28   :  { %p440_p4 = pnand %p438_p3, %p435_p2 }
  0x2a   :  { %443 = shalt.err (!%p440_p4)
}
  0x2b   :  { %s444_s25 = scalar_lea.vmem %s45_s17, 256  ;;  %p449_p6 = scmp.lt.s32.totalorder %s45_s17, %s45_s17 }
  0x2c   :  { %p445_p5 = scmp.ne.s32.totalorder %s45_s17, %s444_s25  ;;  %p450_p7 = scmp.lt.s32.totalorder %s444_s25, %s444_s25 }
  0x2e   :  { %p451_p8 = por %p450_p7, %p449_p6 }
  0x30   :  { %p452_p9 = pnand %p451_p8, %p445_p5 }
  0x32   :  { %455 = shalt.err (!%p452_p9)
}
  0x33   :  { %47 = dma.hbm_to_vmem [thread:$0]  %s578_s3, 256, %s45_s17, [#allocation6]  }
  0x34   :  { %478 = dma.done.wait [#allocation3], 192  }
  0x35   :  { %479 = vsyncadd [#allocation3], 4294967104 }
  0x36   :  { %480 = dma.done.wait [#allocation6], 1792  }
  0x37   :  { %481 = vsyncadd [#allocation6], 4294965504  ;;  %v491_v0 = vmov 0   ;;  %v372_v1 = vld [vmem:[#allocation5 + $0x4] ss:$8 sps:$4 sm:$0xff]   ;;  %vm97_vm0 = vcmask 261120   ;;  %v67_v16 = vlaneseq }
  0x38   :  { %133 = vmatprep.mubr.bf16.mxu0 %v491_v0  ;;  %223 = vmatprep.mubr.bf16.mxu1 %v491_v0  ;;  %v374_v2 = vld [vmem:[#allocation5] ss:$8 sps:$4 sm:$0xff]   ;;  %v375_v3 = vld [vmem:[#allocation5 + $0x24] ss:$8 sps:$4 sm:$0xff]   ;;  %v378_v5 = vld [vmem:[#allocation5 + $0x14] ss:$8 sps:$4 sm:$0xff]  }
  0x39   :  { %101 = vmatprep.subr.bf16.mxu0 %v372_v1  ;;  %v377_v4 = vld [vmem:[#allocation5 + $0x20] ss:$8 sps:$4 sm:$0xff]   ;;  %v380_v6 = vld [vmem:[#allocation5 + $0x10] ss:$8 sps:$4 sm:$0xff]   ;;  %191 = vmatprep.subr.bf16.mxu1 %v375_v3  ;;  %v381_v7 = vld [vmem:[#allocation5 + $0x34] ss:$8 sps:$4 sm:$0xff]  }
  0x3a   :  { %102 = vmatpush1.bf16.msra.mxu0 %v374_v2  ;;  %192 = vmatpush1.bf16.msra.mxu1 %v377_v4  ;;  %v383_v8 = vld [vmem:[#allocation5 + $0x30] ss:$8 sps:$4 sm:$0xff]   ;;  %v60_v9 = vld [vmem:[#allocation2] sm:$0xf]  ;;  %v386_v10 = vld [vmem:[#allocation5 + $0x44] ss:$8 sps:$4 sm:$0xff]  }
  0x3b   :  { %103 = vmatprep.subr.bf16.mxu0 %v378_v5  ;;  %193 = vmatprep.subr.bf16.mxu1 %v381_v7  ;;  %v384_v11 = vld [vmem:[#allocation5 + $0x40] ss:$8 sps:$4 sm:$0xff]   ;;  %v389_v12 = vld [vmem:[#allocation5 + $0x54] ss:$8 sps:$4 sm:$0xff]   ;;  %v149_v13 = vld [vmem:[#allocation2 + $0x4] sm:$0xf] }
  0x3c   :  { %v387_v14 = vld [vmem:[#allocation5 + $0x50] ss:$8 sps:$4 sm:$0xff]   ;;  %v239_v15 = vld [vmem:[#allocation2 + $0x8] sm:$0xf]  ;;  %v68_v17 = vshrl.u32 %v67_v16, 7  ;;  %v58_v24 = vld [vmem:[#allocation7] sm:$0xff] }
  0x3d   :  { %v65_v19 = vld [vmem:[%s577_s2] sm:$0x3]  ;;  %v351_v21 = vld [vmem:[%s577_s2 + $0x2] sm:$0x3]  ;;  %v59_v27 = vld [vmem:[#allocation7 + $0x8] sm:$0xff]  ;;  %vm144_vm1 = vcmp.eq.s32.totalorder %v58_v24, 0 }
  0x3e   :  { %104 = vmatpush1.bf16.msra.mxu0 %v380_v6  ;;  %194 = vmatpush1.bf16.msra.mxu1 %v383_v8  ;;  %v69_v18 = vsub.s32 0, %v68_v17  ;;  %v73_v20 = vsub.s32 1, %v68_v17  ;;  %v357_v34 = vld [vmem:[%s577_s2 + $0x4] sm:$0x3]  ;;  %vm145_vm2 = vcmp.eq.s32.totalorder %v59_v27, 0  ;;  %vm234_vm3 = vcmp.eq.s32.totalorder %v58_v24, 1 }
  0x3f   :  { %281 = vmatprep.subr.bf16.mxu0 %v386_v10  ;;  %vm235_vm4 = vcmp.eq.s32.totalorder %v59_v27, 1  ;;  %vm324_vm5 = vcmp.eq.s32.totalorder %v58_v24, 2  ;;  %s492_s2 = smov [#allocation8]   ;;  %vm325_vm6 = vcmp.eq.s32.totalorder %v59_v27, 2 }
  0x40   :  { %v70_v22 = vrot.slane %v65_v19, %v69_v18  ;;  %v74_v23 = vrot.slane %v65_v19, %v73_v20  ;;  %v161_v25 = vrot.slane %v351_v21, %v69_v18  ;;  %v165_v28 = vrot.slane %v351_v21, %v73_v20  ;;  %s336_s6 = sshll.u32 %s492_s2, 4  ;;  %s337_s6 = int_to_ptr.vmem [resolvable:$true] %s336_s6 }
  0x41   :  { %350 = vmatmul.mubr.msk.bf16.vlgmr.msra.gmra.mrb[0].mxu0 %vm97_vm0, %v60_v9  ;;  %356 = vmatmul.mubr.msk.bf16.vlgmr.msra.gmra.mrb[0].mxu1 %vm97_vm0, %v149_v13  ;;  %v251_v45 = vrot.slane %v357_v34, %v69_v18  ;;  %v255_v48 = vrot.slane %v357_v34, %v73_v20  ;;  %s456_s7 = scalar_lea.vmem %s337_s6, 256  ;;  %p461_p11 = scmp.lt.s32.totalorder %s337_s6, %s337_s6 }
  0x42   :  { %282 = vmatpush1.bf16.msra.mxu0 %v384_v11  ;;  %313 = vmatprep.mubr.bf16.mxu0 %v491_v0  ;;  %p457_p10 = scmp.ne.s32.totalorder %s337_s6, %s456_s7  ;;  %p462_p12 = scmp.lt.s32.totalorder %s456_s7, %s456_s7 }
  0x43   :  { %283 = vmatprep.subr.bf16.mxu0 %v389_v12 }
  0x44   :  { %p463_p13 = por %p462_p12, %p461_p11 }
  0x46   :  { %284 = vmatpush1.bf16.msra.mxu0 %v387_v14  ;;  %p464_p0 = pnand %p463_p13, %p457_p10 }
  0x49   :  { %362 = vmatmul.mubr.msk.bf16.vlgmr.msra.gmra.mrb[4].mxu0 %vm97_vm0, %v239_v15 }
 0x114   :  { %v135_v26 = vpop.f32.mrb[0].mxu0  ;;  %v225_v32 = vpop.f32.mrb[0].mxu1 }
 0x115   :  { %v136_v29 = vadd.f32 %v135_v26, %v70_v22  ;;  %v137_v30 = vpop.f32.mrb[1].mxu0  ;;  %v226_v36 = vadd.f32 %v225_v32, %v161_v25  ;;  %v227_v37 = vpop.f32.mrb[1].mxu1 }
 0x116   :  { %v138_v31 = vadd.f32 %v137_v30, %v74_v23  ;;  %v139_v33 = vpop.f32.mrb[2].mxu0  ;;  %v228_v40 = vadd.f32 %v227_v37, %v165_v28  ;;  %v229_v41 = vpop.f32.mrb[2].mxu1 }
 0x117   :  { %v142_v35 = vmax.f32 %v136_v29, 0.0  ;;  %v140_v38 = vpop.f32.mrb[3].mxu0  ;;  %v232_v43 = vmax.f32 %v226_v36, 0.0  ;;  %v230_v44 = vpop.f32.mrb[3].mxu1 }
 0x118   :  { %v143_v39 = vmax.f32 %v138_v31, 0.0  ;;  %v233_v47 = vmax.f32 %v228_v40, 0.0 }
 0x119   :  { %v146_v42 = vsel %vm144_vm1, %v142_v35, 0.0 }
 0x11a   :  { %v147_v46 = vsel %vm145_vm2, %v143_v39, 0.0  ;;  %v236_v49 = vsel %vm234_vm3, %v232_v43, %v146_v42 }
 0x11b   :  { %v237_v50 = vsel %vm235_vm4, %v233_v47, %v147_v46 }
 0x11c   :  { %v315_v51 = vpop.f32.mrb[4].mxu0 }
 0x11d   :  { %v316_v52 = vadd.f32 %v315_v51, %v251_v45  ;;  %v317_v53 = vpop.f32.mrb[5].mxu0 }
 0x11e   :  { %v318_v54 = vadd.f32 %v317_v53, %v255_v48  ;;  %v319_v55 = vpop.f32.mrb[6].mxu0 }
 0x11f   :  { %v322_v56 = vmax.f32 %v316_v52, 0.0  ;;  %v320_v57 = vpop.f32.mrb[7].mxu0 }
 0x120   :  { %v323_v58 = vmax.f32 %v318_v54, 0.0 }
 0x121   :  { %v326_v59 = vsel %vm324_vm5, %v322_v56, %v236_v49 }
 0x122   :  { %v327_v60 = vsel %vm325_vm6, %v323_v58, %v237_v50  ;;  %328 = vst [vmem:[#allocation8] sm:$0xff] %v326_v59 }
 0x123   :  { %329 = vst [vmem:[#allocation8 + $0x8] sm:$0xff] %v327_v60 }
 0x124   :  { %467 = shalt.err (!%p464_p0)
}
 0x125   :  { %s468_s10 = scalar_lea.hbm %s579_s4, 256 }
 0x126   :  { %p469_p1 = scmp.ne.s32.totalorder %s579_s4, %s468_s10  ;;  %p472_p2 = scmp.lt.u32.totalorder %s468_s10, %s579_s4 }
 0x128   :  { %p474_p3 = pnand %p472_p2, %p469_p1 }
 0x12a   :  { %477 = shalt.err (!%p474_p3)
}
 0x12b   :  { %339 = dma.vmem_to_hbm [thread:$0]  %s337_s6, 256, %s579_s4, [#allocation4]  }
 0x12c   :  { %482 = dma.done.wait [#allocation4], 256  }
 0x12d   :  { %483 = vsyncadd [#allocation4], 4294967040 }
 0x12e   :  { %343 = vsyncpa [#allocation3], 1 }
 0x12f   :  { %344 = vsyncpa [#allocation6], 1 }
 0x130   :  { %345 = vsyncpa [#allocation4], 1 }

</bundles_post_ra>
